<compile_context>
chip_gen: v7x
topology: tpu7x:2x2x1
jax: 0.10.0
libtpu: 0.0.40
codegen_flags: <defaults>
</compile_context>

<pallas_src>
import functools

import jax
import jax.numpy as jnp
from jax import lax
from jax.experimental import pallas as pl
from jax.experimental.pallas import tpu as pltpu

_LANES = 128
_HIGHEST = lax.Precision.HIGHEST


def _rnn_fused_kernel(x_ref, wih_t_ref, bcomb_ref, whh_t_ref, wfc_t_ref, bfc_ref,
                      out_ref, *, T, B):
    """Fused input projection + serial tanh recurrence + fc head (single invocation).

    x_ref:     (T*B, D)   time-major flattened raw input
    wih_t_ref: (D, H)     == W_ih^T (contraction-ready)
    bcomb_ref: (1, H)     == b_ih + b_hh (folded once at prep time)
    whh_t_ref: (H, H)     == W_hh^T
    wfc_t_ref: (H, Cpad)  == W_fc^T zero-padded to a 128-multiple class width
    bfc_ref:   (1, Cpad)  zero-padded fc bias
    out_ref:   (B, Cpad)  lane-dense logits slab (true logits live in cols [:C])
    """
    H = whh_t_ref.shape[0]

    # Hoisted input projection for ALL timesteps: one (T*B, D) x (D, H) MXU matmul
    # with the folded bias, kept resident as a value (VMEM/vregs) for the whole loop.
    xproj = (
        jnp.dot(x_ref[...], wih_t_ref[...],
                preferred_element_type=jnp.float32, precision=_HIGHEST)
        + bcomb_ref[...]
    )                                                           # (T*B, H)

    whh_t = whh_t_ref[...]                                      # loaded once, reused

    # Serial recurrence. T is small & static -> fully unrolled Python loop with
    # STATIC slices of the already-materialized xproj (no per-step sub-tile ref loads
    # on the latency-bound chain).
    h = jnp.zeros((B, H), jnp.float32)
    for t in range(T):
        h = jnp.tanh(
            xproj[t * B:(t + 1) * B, :]
            + jnp.dot(h, whh_t, preferred_element_type=jnp.float32,
                      precision=_HIGHEST)
        )

    # Classifier head on the last hidden state; lane-dense (>=128-wide) store.
    out_ref[...] = (
        jnp.dot(h, wfc_t_ref[...], preferred_element_type=jnp.float32,
                precision=_HIGHEST)
        + bfc_ref[...]
    ).astype(out_ref.dtype)


def prepare_params(params):
    """One-time parameter preparation (hoisted out of the per-call forward):
    pre-transpose weights, fold the two RNN biases, zero-pad the fc head to a
    lane-dense (128-multiple) class dimension. Padding is mathematically exact:
    padded columns of W_fc^T / b_fc are zero and are sliced away after the kernel."""
    w_ih, w_hh, b_ih, b_hh, w_fc, b_fc = params
    H = w_ih.shape[0]
    C = w_fc.shape[0]
    c_pad = max(_LANES, ((C + _LANES - 1) // _LANES) * _LANES)

    wih_t = jnp.asarray(w_ih.T, jnp.float32)                        # (D, H)
    bcomb = jnp.asarray((b_ih + b_hh).reshape(1, H), jnp.float32)   # (1, H)
    whh_t = jnp.asarray(w_hh.T, jnp.float32)                        # (H, H)
    wfc_t = jnp.zeros((H, c_pad), jnp.float32).at[:, :C].set(w_fc.T)
    bfc = jnp.zeros((1, c_pad), jnp.float32).at[:, :C].set(b_fc.reshape(1, C))
    return (wih_t, bcomb, whh_t, wfc_t, bfc)


@functools.partial(jax.jit, static_argnames=("num_classes",))
def rnn_classifier_forward(x, prepped, *, num_classes):
    """x: (B, T, D) or (B, D) float32. Returns logits (B, num_classes)."""
    if x.ndim == 2:                             # mirror torch's unsqueeze(1)
        x = x[:, None, :]
    B, T, D = x.shape
    wih_t, bcomb, whh_t, wfc_t, bfc = prepped
    c_pad = wfc_t.shape[1]

    # Time-major flatten of the RAW input (fused by XLA under this jit). The input
    # projection itself runs inside the kernel, so x_proj never touches HBM.
    x_tm = jnp.transpose(x, (1, 0, 2)).reshape(T * B, D).astype(jnp.float32)

    kernel = functools.partial(_rnn_fused_kernel, T=T, B=B)
    vmem = pltpu.MemorySpace.VMEM
    out_pad = pl.pallas_call(
        kernel,
        out_shape=jax.ShapeDtypeStruct((B, c_pad), jnp.float32),
        in_specs=[pl.BlockSpec(memory_space=vmem)] * 6,   # everything VMEM-resident
        out_specs=pl.BlockSpec(memory_space=vmem),
    )(x_tm, wih_t, bcomb, whh_t, wfc_t, bfc)

    return out_pad[:, :num_classes]


def init_params(key, input_dim, hidden_dim, num_classes):
    """Deterministic init matching PyTorch's default U(-1/sqrt(H), 1/sqrt(H)) ranges."""
    ks = jax.random.split(key, 6)
    bound = 1.0 / jnp.sqrt(hidden_dim)
    w_ih = jax.random.uniform(ks[0], (hidden_dim, input_dim), jnp.float32, -bound, bound)
    w_hh = jax.random.uniform(ks[1], (hidden_dim, hidden_dim), jnp.float32, -bound, bound)
    b_ih = jax.random.uniform(ks[2], (hidden_dim,), jnp.float32, -bound, bound)
    b_hh = jax.random.uniform(ks[3], (hidden_dim,), jnp.float32, -bound, bound)
    w_fc = jax.random.uniform(ks[4], (num_classes, hidden_dim), jnp.float32, -bound, bound)
    b_fc = jax.random.uniform(ks[5], (num_classes,), jnp.float32, -bound, bound)
    return (w_ih, w_hh, b_ih, b_hh, w_fc, b_fc)


def _ref_forward(x, params):
    """Pure-JAX reference (mirrors the PyTorch module), fp32 HIGHEST precision."""
    if x.ndim == 2:
        x = x[:, None, :]
    w_ih, w_hh, b_ih, b_hh, w_fc, b_fc = params
    B, T, D = x.shape
    h = jnp.zeros((B, w_ih.shape[0]), jnp.float32)
    for t in range(T):
        h = jnp.tanh(
            jnp.dot(x[:, t, :], w_ih.T, precision=_HIGHEST) + b_ih
            + jnp.dot(h, w_hh.T, precision=_HIGHEST) + b_hh
        )
    return jnp.dot(h, w_fc.T, precision=_HIGHEST) + b_fc


if __name__ == "__main__":
    B, T, D, H, C = 2, 8, 16, 32, 4
    key = jax.random.PRNGKey(0)
    k_x, k_p = jax.random.split(key)
    x = jax.random.normal(k_x, (B, T, D), jnp.float32)
    params = init_params(k_p, D, H, C)

    prepped = prepare_params(params)          # one-time prep (not per forward call)

    out = rnn_classifier_forward(x, prepped, num_classes=C)
    out = jax.block_until_ready(out)

    ref = _ref_forward(x, params)
    assert out.shape == (B, C)
    assert jnp.allclose(out, ref, atol=1e-5, rtol=1e-5), "mismatch vs reference"

    print("KERNEL_OK")
</pallas_src>

<mosaic_0001>
module attributes {stable_mosaic.version = 11 : i64} {
  func.func @_rnn_fused_kernel(%arg0: memref<16x16xf32, #tpu.memory_space<vmem>>, %arg1: memref<16x32xf32, #tpu.memory_space<vmem>>, %arg2: memref<1x32xf32, #tpu.memory_space<vmem>>, %arg3: memref<32x32xf32, #tpu.memory_space<vmem>>, %arg4: memref<32x128xf32, #tpu.memory_space<vmem>>, %arg5: memref<1x128xf32, #tpu.memory_space<vmem>>, %arg6: memref<2x128xf32, #tpu.memory_space<vmem>>) attributes {dimension_semantics = [], scalar_prefetch = 0 : i64, scratch_operands = 0 : i64, tpu.core_type = #tpu.core_type<tc>} {
    %c0 = arith.constant 0 : index
    %c0_0 = arith.constant 0 : index
    %0 = vector.load %arg0[%c0, %c0_0] : memref<16x16xf32, #tpu.memory_space<vmem>>, vector<16x16xf32>
    %c0_1 = arith.constant 0 : index
    %c0_2 = arith.constant 0 : index
    %1 = vector.load %arg1[%c0_1, %c0_2] : memref<16x32xf32, #tpu.memory_space<vmem>>, vector<16x32xf32>
    %cst = arith.constant dense<0.000000e+00> : vector<16x32xf32>
    %2 = tpu.matmul %0, %1, %cst {dimension_numbers = #tpu.dot_dimension_numbers<[1], [0], [0], [1], [0, 0, 1, 1], [], []>, precision = #tpu.contract_precision<fp32>} : vector<16x16xf32>, vector<16x32xf32>, vector<16x32xf32> -> vector<16x32xf32>
    %c0_3 = arith.constant 0 : index
    %c0_4 = arith.constant 0 : index
    %3 = vector.load %arg2[%c0_3, %c0_4] : memref<1x32xf32, #tpu.memory_space<vmem>>, vector<1x32xf32>
    %4 = vector.broadcast %3 : vector<1x32xf32> to vector<16x32xf32>
    %5 = arith.addf %2, %4 : vector<16x32xf32>
    %c0_5 = arith.constant 0 : index
    %c0_6 = arith.constant 0 : index
    %6 = vector.load %arg3[%c0_5, %c0_6] : memref<32x32xf32, #tpu.memory_space<vmem>>, vector<32x32xf32>
    %cst_7 = arith.constant 0.000000e+00 : f32
    %7 = vector.broadcast %cst_7 : f32 to vector<2x32xf32>
    %8 = vector.extract_strided_slice %5 {offsets = [0, 0], sizes = [2, 32], strides = [1, 1]} : vector<16x32xf32> to vector<2x32xf32>
    %cst_8 = arith.constant dense<0.000000e+00> : vector<2x32xf32>
    %9 = tpu.matmul %7, %6, %cst_8 {dimension_numbers = #tpu.dot_dimension_numbers<[1], [0], [0], [1], [0, 0, 1, 1], [], []>, precision = #tpu.contract_precision<fp32>} : vector<2x32xf32>, vector<32x32xf32>, vector<2x32xf32> -> vector<2x32xf32>
    %10 = arith.addf %8, %9 : vector<2x32xf32>
    %11 = math.tanh %10 : vector<2x32xf32>
    %12 = vector.extract_strided_slice %5 {offsets = [2, 0], sizes = [2, 32], strides = [1, 1]} : vector<16x32xf32> to vector<2x32xf32>
    %cst_9 = arith.constant dense<0.000000e+00> : vector<2x32xf32>
    %13 = tpu.matmul %11, %6, %cst_9 {dimension_numbers = #tpu.dot_dimension_numbers<[1], [0], [0], [1], [0, 0, 1, 1], [], []>, precision = #tpu.contract_precision<fp32>} : vector<2x32xf32>, vector<32x32xf32>, vector<2x32xf32> -> vector<2x32xf32>
    %14 = arith.addf %12, %13 : vector<2x32xf32>
    %15 = math.tanh %14 : vector<2x32xf32>
    %16 = vector.extract_strided_slice %5 {offsets = [4, 0], sizes = [2, 32], strides = [1, 1]} : vector<16x32xf32> to vector<2x32xf32>
    %cst_10 = arith.constant dense<0.000000e+00> : vector<2x32xf32>
    %17 = tpu.matmul %15, %6, %cst_10 {dimension_numbers = #tpu.dot_dimension_numbers<[1], [0], [0], [1], [0, 0, 1, 1], [], []>, precision = #tpu.contract_precision<fp32>} : vector<2x32xf32>, vector<32x32xf32>, vector<2x32xf32> -> vector<2x32xf32>
    %18 = arith.addf %16, %17 : vector<2x32xf32>
    %19 = math.tanh %18 : vector<2x32xf32>
    %20 = vector.extract_strided_slice %5 {offsets = [6, 0], sizes = [2, 32], strides = [1, 1]} : vector<16x32xf32> to vector<2x32xf32>
    %cst_11 = arith.constant dense<0.000000e+00> : vector<2x32xf32>
    %21 = tpu.matmul %19, %6, %cst_11 {dimension_numbers = #tpu.dot_dimension_numbers<[1], [0], [0], [1], [0, 0, 1, 1], [], []>, precision = #tpu.contract_precision<fp32>} : vector<2x32xf32>, vector<32x32xf32>, vector<2x32xf32> -> vector<2x32xf32>
    %22 = arith.addf %20, %21 : vector<2x32xf32>
    %23 = math.tanh %22 : vector<2x32xf32>
    %24 = vector.extract_strided_slice %5 {offsets = [8, 0], sizes = [2, 32], strides = [1, 1]} : vector<16x32xf32> to vector<2x32xf32>
    %cst_12 = arith.constant dense<0.000000e+00> : vector<2x32xf32>
    %25 = tpu.matmul %23, %6, %cst_12 {dimension_numbers = #tpu.dot_dimension_numbers<[1], [0], [0], [1], [0, 0, 1, 1], [], []>, precision = #tpu.contract_precision<fp32>} : vector<2x32xf32>, vector<32x32xf32>, vector<2x32xf32> -> vector<2x32xf32>
    %26 = arith.addf %24, %25 : vector<2x32xf32>
    %27 = math.tanh %26 : vector<2x32xf32>
    %28 = vector.extract_strided_slice %5 {offsets = [10, 0], sizes = [2, 32], strides = [1, 1]} : vector<16x32xf32> to vector<2x32xf32>
    %cst_13 = arith.constant dense<0.000000e+00> : vector<2x32xf32>
    %29 = tpu.matmul %27, %6, %cst_13 {dimension_numbers = #tpu.dot_dimension_numbers<[1], [0], [0], [1], [0, 0, 1, 1], [], []>, precision = #tpu.contract_precision<fp32>} : vector<2x32xf32>, vector<32x32xf32>, vector<2x32xf32> -> vector<2x32xf32>
    %30 = arith.addf %28, %29 : vector<2x32xf32>
    %31 = math.tanh %30 : vector<2x32xf32>
    %32 = vector.extract_strided_slice %5 {offsets = [12, 0], sizes = [2, 32], strides = [1, 1]} : vector<16x32xf32> to vector<2x32xf32>
    %cst_14 = arith.constant dense<0.000000e+00> : vector<2x32xf32>
    %33 = tpu.matmul %31, %6, %cst_14 {dimension_numbers = #tpu.dot_dimension_numbers<[1], [0], [0], [1], [0, 0, 1, 1], [], []>, precision = #tpu.contract_precision<fp32>} : vector<2x32xf32>, vector<32x32xf32>, vector<2x32xf32> -> vector<2x32xf32>
    %34 = arith.addf %32, %33 : vector<2x32xf32>
    %35 = math.tanh %34 : vector<2x32xf32>
    %36 = vector.extract_strided_slice %5 {offsets = [14, 0], sizes = [2, 32], strides = [1, 1]} : vector<16x32xf32> to vector<2x32xf32>
    %cst_15 = arith.constant dense<0.000000e+00> : vector<2x32xf32>
    %37 = tpu.matmul %35, %6, %cst_15 {dimension_numbers = #tpu.dot_dimension_numbers<[1], [0], [0], [1], [0, 0, 1, 1], [], []>, precision = #tpu.contract_precision<fp32>} : vector<2x32xf32>, vector<32x32xf32>, vector<2x32xf32> -> vector<2x32xf32>
    %38 = arith.addf %36, %37 : vector<2x32xf32>
    %39 = math.tanh %38 : vector<2x32xf32>
    %c0_16 = arith.constant 0 : index
    %c0_17 = arith.constant 0 : index
    %40 = vector.load %arg4[%c0_16, %c0_17] : memref<32x128xf32, #tpu.memory_space<vmem>>, vector<32x128xf32>
    %cst_18 = arith.constant dense<0.000000e+00> : vector<2x128xf32>
    %41 = tpu.matmul %39, %40, %cst_18 {dimension_numbers = #tpu.dot_dimension_numbers<[1], [0], [0], [1], [0, 0, 1, 1], [], []>, precision = #tpu.contract_precision<fp32>} : vector<2x32xf32>, vector<32x128xf32>, vector<2x128xf32> -> vector<2x128xf32>
    %c0_19 = arith.constant 0 : index
    %c0_20 = arith.constant 0 : index
    %42 = vector.load %arg5[%c0_19, %c0_20] : memref<1x128xf32, #tpu.memory_space<vmem>>, vector<1x128xf32>
    %43 = vector.broadcast %42 : vector<1x128xf32> to vector<2x128xf32>
    %44 = arith.addf %41, %43 : vector<2x128xf32>
    %c0_21 = arith.constant 0 : index
    %c0_22 = arith.constant 0 : index
    %45 = vector.load %arg6[%c0_21, %c0_22] : memref<2x128xf32, #tpu.memory_space<vmem>>, vector<2x128xf32>
    tpu.vector_store %arg6[%c0_21, %c0_22], %44 {strides = array<i32>} : memref<2x128xf32, #tpu.memory_space<vmem>>, vector<2x128xf32>,
    return
  }
}

</mosaic_0001>

<bundles_post_ra>
// kernel: rnn_classifier_forward.1
= control target key start
LH: loop header
LB: loop body
LE: loop exit
PB: predicated region body
PF: predicated region fallthrough
CT: control target
= control target key end

     0   :  { %11 = vsyncpa [#allocation3], 0  ;;  %s6971_s0 = inlined_call_operand.vmem [shape: f32[16,16], index: 0, kind: input, shape index: {}]   ;;  %s6972_s1 = inlined_call_operand.vmem [shape: f32[16,32], index: 1, kind: input, shape index: {}]   ;;  %s6973_s2 = inlined_call_operand.vmem [shape: f32[1,32], index: 2, kind: input, shape index: {}]   ;;  %s6974_s3 = inlined_call_operand.vmem [shape: f32[32,32], index: 3, kind: input, shape index: {}]   ;;  %s6975_s4 = inlined_call_operand.hbm [shape: f32[32,128], index: 4, kind: input, shape index: {}]   ;;  %s6976_s5 = inlined_call_operand.vmem [shape: f32[1,128], index: 5, kind: input, shape index: {}]   ;;  %s6977_s6 = inlined_call_operand.hbm [shape: f32[2,128], index: 6, kind: output, shape index: {}]  }
   0x1   :  { %12 = vsyncpa [#allocation4], 0  ;;  %s6456_s21 = smov [#allocation2]   ;;  %s6408_s25 = scalar_lea.hbm %s6975_s4, 512 }
   0x2   :  { %s26_s22 = sshll.u32 %s6456_s21, 4  ;;  %p6409_p0 = scmp.ne.s32.totalorder %s6975_s4, %s6408_s25  ;;  %s27_s22 = int_to_ptr.vmem [resolvable:$true] %s26_s22 }
   0x3   :  { %p6412_p1 = scmp.lt.u32.totalorder %s6408_s25, %s6975_s4 }
   0x5   :  { %p6414_p2 = pnand %p6412_p1, %p6409_p0 }
   0x7   :  { %6417 = shalt.err (!%p6414_p2)
}
   0x8   :  { %s6418_s30 = scalar_lea.vmem %s27_s22, 512  ;;  %p6423_p4 = scmp.lt.s32.totalorder %s27_s22, %s27_s22 }
   0x9   :  { %p6419_p3 = scmp.ne.s32.totalorder %s27_s22, %s6418_s30  ;;  %p6424_p5 = scmp.lt.s32.totalorder %s6418_s30, %s6418_s30 }
   0xb   :  { %p6425_p6 = por %p6424_p5, %p6423_p4 }
   0xd   :  { %p6426_p7 = pnand %p6425_p6, %p6419_p3 }
   0xf   :  { %6429 = shalt.err (!%p6426_p7)
}
  0x10   :  { %s6457_s7 = smov 128   ;;  %s6458_s8 = smov 8  }
  0x11   :  { %32 = dma.hbm_to_vmem [thread:$0]  %s6975_s4, 512, %s27_s22, [#allocation3], %s6457_s7, %s6457_s7, %s6458_s8  }
  0x12   :  { %6452 = dma.done.wait [#allocation3], 512  }
  0x13   :  { %6453 = vsyncadd [#allocation3], 4294966784  ;;  %vm49_vm0 = vcmask 130048   ;;  %v40_v0 = vld [vmem:[%s6972_s1] sm:$0xff]  ;;  %v41_v1 = vld [vmem:[%s6972_s1 + $0x8] sm:$0xff]  ;;  %v6459_v31 = vmov 0.0|0.0  }
  0x14   :  { %v38_v2 = vld [vmem:[%s6971_s0] sm:$0xff]  ;;  %v57_v3 = vand.u32 4294901760, %v40_v0  ;;  %v60_v4 = vand.u32 4294901760, %v41_v1  ;;  %v39_v6 = vld [vmem:[%s6971_s0 + $0x8] sm:$0xff]  ;;  %v560_v13 = vld [vmem:[%s6974_s3 + $0x10] sm:$0xff]  ;;  %vm6460_vm1 = vmmov 0  }
  0x15   :  { %v51_v5 = vsel %vm49_vm0, %v38_v2, 0  ;;  %v558_v7 = vld [vmem:[%s6974_s3] sm:$0xff]  ;;  %v559_v8 = vld [vmem:[%s6974_s3 + $0x8] sm:$0xff]  ;;  %v54_v10 = vsel %vm49_vm0, %v39_v6, 0  ;;  %v561_v14 = vld [vmem:[%s6974_s3 + $0x18] sm:$0xff]  ;;  %v573_v20 = vand.u32 4294901760, %v560_v13 }
  0x16   :  { %v6528_v9 = vand.u32 4294901760, %v51_v5  ;;  %v567_v11 = vand.u32 4294901760, %v558_v7  ;;  %v570_v12 = vand.u32 4294901760, %v559_v8  ;;  %v6536_v15 = vpack.c.bf16 %v60_v4, %v57_v3  ;;  %s6462_s26 = smov [#allocation5]  }
  0x17   :  { %v6538_v16 = vsub.f32 %v40_v0, %v57_v3  ;;  %v6540_v17 = vsub.f32 %v41_v1, %v60_v4  ;;  %v6542_v18 = vand.u32 4294901760, %v54_v10  ;;  %v576_v21 = vand.u32 4294901760, %v561_v14  ;;  %v5022_v0 = vld [vmem:[%s6973_s2] ss:$0 sm:$0xff]  ;;  %s5013_s27 = sshll.u32 %s6462_s26, 4  ;;  %s5014_s27 = int_to_ptr.vmem [resolvable:$true] %s5013_s27 }
  0x18   :  { %5329 = vmatprep.mubr.f32.mxu0 %v6528_v9  ;;  %v6546_v19 = vsub.f32 %v51_v5, %v6528_v9  ;;  %5955 = vmatprep.subr.bf16.mxu1 %v6536_v15  ;;  %v6556_v26 = vpack.c.bf16 %v570_v12, %v567_v11  ;;  %v6558_v27 = vsub.f32 %v558_v7, %v567_v11  ;;  %v6461_v54 = vmov 0.0   ;;  %s6430_s28 = scalar_lea.vmem %s5014_s27, 32  ;;  %p6435_p9 = scmp.lt.s32.totalorder %s5014_s27, %s5014_s27 }
  0x19   :  { %v146_v22 = vand.u32 4294901760, %v6538_v16  ;;  %v153_v23 = vand.u32 4294901760, %v6540_v17  ;;  %v6552_v24 = vsub.f32 %v54_v10, %v6542_v18  ;;  %5957 = vmatpush3.bf16.msra.mxu1 %v6536_v15  ;;  %v6560_v28 = vsub.f32 %v559_v8, %v570_v12  ;;  %p6431_p8 = scmp.ne.s32.totalorder %s5014_s27, %s6430_s28  ;;  %p6436_p10 = scmp.lt.s32.totalorder %s6430_s28, %s6430_s28 }
  0x1a   :  { %v125_v25 = vand.u32 4294901760, %v6546_v19  ;;  %5978 = vmatprep.subr.bf16.mxu1 %v6459_v31  ;;  %v6566_v33 = vsub.f32 %v560_v13, %v573_v20  ;;  %v648_v35 = vand.u32 4294901760, %v6558_v27  ;;  %v6571_v37 = vsub.f32 %v561_v14, %v576_v21 }
  0x1b   :  { %v147_v29 = vsub.f32 %v6538_v16, %v146_v22  ;;  %v154_v30 = vsub.f32 %v6540_v17, %v153_v23  ;;  %v135_v32 = vand.u32 4294901760, %v6552_v24  ;;  %v655_v36 = vand.u32 4294901760, %v6560_v28  ;;  %p6437_p11 = por %p6436_p10, %p6435_p9 }
  0x1c   :  { %v126_v34 = vsub.f32 %v6546_v19, %v125_v25  ;;  %v662_v41 = vand.u32 4294901760, %v6566_v33  ;;  %v649_v43 = vsub.f32 %v6558_v27, %v648_v35  ;;  %v669_v45 = vand.u32 4294901760, %v6571_v37 }
  0x1d   :  { %v148_v38 = vand.u32 4294901760, %v147_v29  ;;  %v155_v39 = vand.u32 4294901760, %v154_v30  ;;  %v136_v40 = vsub.f32 %v6552_v24, %v135_v32  ;;  %v656_v44 = vsub.f32 %v6560_v28, %v655_v36  ;;  %p6438_p12 = pnand %p6437_p11, %p6431_p8 }
  0x1e   :  { %v127_v42 = vand.u32 4294901760, %v126_v34  ;;  %v5962_v47 = vpack.c.bf16 %v6540_v17, %v6538_v16  ;;  %v6580_v49 = vpack.c.bf16 %v576_v21, %v573_v20  ;;  %v650_v50 = vand.u32 4294901760, %v649_v43 }
  0x1f   :  { %v5958_v46 = vpack.c.bf16 %v155_v39, %v148_v38  ;;  %v137_v48 = vand.u32 4294901760, %v136_v40  ;;  %v657_v51 = vand.u32 4294901760, %v656_v44  ;;  %v663_v52 = vsub.f32 %v6566_v33, %v662_v41 }
  0x20   :  { %5322 = vmatprep.mubr.f32.mxu1 %v127_v42  ;;  %v670_v53 = vsub.f32 %v6571_v37, %v669_v45  ;;  %v5970_v59 = vpack.c.bf16 %v153_v23, %v146_v22  ;;  %v6607_v60 = vpack.c.bf16 %v6560_v28, %v6558_v27  ;;  %v6614_v61 = vpack.c.bf16 %v6571_v37, %v6566_v33 }
  0x21   :  { %5959 = vmatprep.subr.bf16.mxu0 %v5958_v46  ;;  %5323 = vmatmul.mubr.f32.vlgmr.msra.gmra.mrb[0].mxu1 %v137_v48  ;;  %v6590_v55 = vpack.c.bf16 %v657_v51, %v650_v50  ;;  %v664_v56 = vand.u32 4294901760, %v663_v52  ;;  %v6620_v62 = vpack.c.bf16 %v655_v36, %v648_v35  ;;  %v6630_v63 = vpack.c.bf16 %v669_v45, %v662_v41 }
  0x22   :  { %5961 = vmatpush3.bf16.msra.mxu0 %v5958_v46  ;;  %5980 = vmatpush3.bf16.msra.mxu1 %v6556_v26  ;;  %v671_v57 = vand.u32 4294901760, %v670_v53  ;;  %vm562_vm2 = vcmask 261120  }
  0x23   :  { %5963 = vmatprep.subr.bf16.mxu0 %v5962_v47  ;;  %5981 = vmatprep.subr.bf16.mxu1 %v6459_v31 }
  0x24   :  { %5368 = vmatprep.mubr.msk.f32.mxu1 %vm6460_vm1, %v6461_v54  ;;  %v6597_v58 = vpack.c.bf16 %v671_v57, %v664_v56 }
  0x25   :  { %5330 = vmatmul.mubr.f32.vlgmr.msra.gmra.mrb[0].mxu0 %v6542_v18 }
  0x26   :  { %5965 = vmatpush3.bf16.msra.mxu0 %v5962_v47  ;;  %5983 = vmatpush3.bf16.msra.mxu1 %v6580_v49 }
  0x27   :  { %5336 = vmatprep.mubr.f32.mxu0 %v6546_v19  ;;  %5967 = vmatprep.subr.bf16.mxu0 %v6536_v15 }
  0x28   :  { %5984 = vmatprep.subr.bf16.mxu1 %v6459_v31 }
  0x29   :  { %5369 = vmatmul.mubr.f32.vlgmr.msra.gmra.mrb[2].mxu1 %v6461_v54 }
  0x2a   :  { %5986 = vmatpush3.bf16.msra.mxu1 %v6590_v55  ;;  %5379 = vmatprep.mubr.msk.f32.mxu1 %vm6460_vm1, %v6461_v54 }
  0x2b   :  { %5987 = vmatprep.subr.bf16.mxu1 %v6459_v31 }
  0x2d   :  { %5337 = vmatmul.mubr.f32.vlgmr.msra.gmra.mrb[0].mxu0 %v6552_v24 }
  0x2e   :  { %5969 = vmatpush3.bf16.msra.mxu0 %v6536_v15  ;;  %5989 = vmatpush3.bf16.msra.mxu1 %v6597_v58 }
  0x2f   :  { %5343 = vmatprep.mubr.f32.mxu0 %v125_v25  ;;  %5971 = vmatprep.subr.bf16.mxu0 %v5970_v59 }
  0x30   :  { %5990 = vmatprep.subr.bf16.mxu1 %v6459_v31 }
  0x31   :  { %5380 = vmatmul.mubr.f32.vlgmr.msra.gmra.mrb[4].mxu1 %v6461_v54 }
  0x32   :  { %5992 = vmatpush3.bf16.msra.mxu1 %v6607_v60  ;;  %5390 = vmatprep.mubr.msk.f32.mxu1 %vm6460_vm1, %v6461_v54 }
  0x33   :  { %5993 = vmatprep.subr.bf16.mxu1 %v6459_v31 }
  0x35   :  { %5344 = vmatmul.mubr.f32.vlgmr.msra.gmra.mrb[0].mxu0 %v135_v32 }
  0x36   :  { %5973 = vmatpush3.bf16.msra.mxu0 %v5970_v59  ;;  %5995 = vmatpush3.bf16.msra.mxu1 %v6614_v61 }
  0x37   :  { %5350 = vmatprep.mubr.f32.mxu0 %v6528_v9  ;;  %5975 = vmatprep.subr.bf16.mxu0 %v6536_v15 }
  0x38   :  { %6002 = vmatprep.subr.bf16.mxu1 %v6459_v31 }
  0x39   :  { %5391 = vmatmul.mubr.f32.vlgmr.msra.gmra.mrb[6].mxu1 %v6461_v54 }
  0x3a   :  { %6004 = vmatpush3.bf16.msra.mxu1 %v6620_v62  ;;  %5412 = vmatprep.mubr.msk.f32.mxu1 %vm6460_vm1, %v6461_v54 }
  0x3b   :  { %6005 = vmatprep.subr.bf16.mxu1 %v6459_v31 }
  0x3d   :  { %5351 = vmatmul.mubr.f32.vlgmr.msra.gmra.mrb[0].mxu0 %v6542_v18 }
  0x3e   :  { %5977 = vmatpush3.bf16.msra.mxu0 %v6536_v15  ;;  %5357 = vmatprep.mubr.f32.mxu0 %v6528_v9 }
  0x3f   :  { %5996 = vmatprep.subr.bf16.mxu0 %v6459_v31  ;;  %6007 = vmatpush3.bf16.msra.mxu1 %v6630_v63 }
  0x40   :  { %6014 = vmatprep.subr.bf16.mxu1 %v6459_v31 }
  0x42   :  { %5413 = vmatmul.mubr.f32.vlgmr.msra.gmra.mrb[8].mxu1 %v6461_v54 }
  0x43   :  { %6016 = vmatpush3.bf16.msra.mxu1 %v6556_v26  ;;  %5434 = vmatprep.mubr.msk.f32.mxu1 %vm6460_vm1, %v6461_v54 }
  0x44   :  { %6017 = vmatprep.subr.bf16.mxu1 %v6459_v31 }
  0x45   :  { %5358 = vmatmul.mubr.f32.vlgmr.msra.gmra.mrb[0].mxu0 %v6542_v18 }
  0x46   :  { %5998 = vmatpush3.bf16.msra.mxu0 %v6556_v26  ;;  %5401 = vmatprep.mubr.msk.f32.mxu0 %vm6460_vm1, %v6461_v54 }
  0x47   :  { %5999 = vmatprep.subr.bf16.mxu0 %v6459_v31  ;;  %6019 = vmatpush3.bf16.msra.mxu1 %v6580_v49 }
  0x48   :  { %6020 = vmatprep.subr.bf16.mxu1 %v6459_v31 }
  0x4a   :  { %6001 = vmatpush3.bf16.msra.mxu0 %v6580_v49 }
  0x4b   :  { %6008 = vmatprep.subr.bf16.mxu0 %v6459_v31 }
  0x4d   :  { %5402 = vmatmul.mubr.f32.vlgmr.msra.gmra.mrb[2].mxu0 %v6461_v54 }
  0x4e   :  { %6010 = vmatpush3.bf16.msra.mxu0 %v6556_v26  ;;  %5423 = vmatprep.mubr.msk.f32.mxu0 %vm6460_vm1, %v6461_v54 }
  0x4f   :  { %6011 = vmatprep.subr.bf16.mxu0 %v6459_v31 }
  0x52   :  { %6013 = vmatpush3.bf16.msra.mxu0 %v6580_v49 }
  0x53   :  { %6050 = vmatprep.subr.bf16.mxu0 %v6459_v31 }
  0x55   :  { %5424 = vmatmul.mubr.f32.vlgmr.msra.gmra.mrb[4].mxu0 %v6461_v54 }
  0x56   :  { %6052 = vmatpush3.bf16.msra.mxu0 %v6556_v26  ;;  %5500 = vmatprep.mubr.msk.f32.mxu0 %vm6460_vm1, %v6461_v54 }
  0x57   :  { %6053 = vmatprep.subr.bf16.mxu0 %v6459_v31 }
  0x5a   :  { %6055 = vmatpush3.bf16.msra.mxu0 %v6580_v49 }
  0x5b   :  { %6056 = vmatprep.subr.bf16.mxu0 %v6459_v31 }
  0xf4   :  { %v5324_v1 = vpop.f32.mrb[0].mxu1 }
  0xf5   :  { %v140_v2 = vadd.f32 %v5324_v1, %v5022_v0  ;;  %v129_v3 = vpop.f32.mrb[1].mxu1 }
  0xf6   :  { %v130_v14 = vadd.f32 %v5022_v0, %v129_v3 }
  0xfc   :  { %v641_v4 = vpop.f32.mrb[2].mxu1 }
  0xfd   :  { %v5370_v5 = vpop.f32.mrb[3].mxu1 }
 0x104   :  { %v732_v6 = vpop.f32.mrb[4].mxu1 }
 0x105   :  { %v733_v7 = vadd.f32 %v732_v6, %v641_v4  ;;  %v5381_v8 = vpop.f32.mrb[5].mxu1 }
 0x10c   :  { %v812_v9 = vpop.f32.mrb[6].mxu1 }
 0x10d   :  { %v813_v10 = vadd.f32 %v812_v9, %v733_v7  ;;  %v5392_v11 = vpop.f32.mrb[7].mxu1 }
 0x115   :  { %v972_v12 = vpop.f32.mrb[8].mxu1 }
 0x116   :  { %v5414_v13 = vpop.f32.mrb[9].mxu1 }
 0x118   :  { %v5359_v15 = vpop.f32.mrb[0].mxu0 }
 0x119   :  { %v6669_v16 = vadd.f32 %v5359_v15, %v140_v2  ;;  %v548_v17 = vpop.f32.mrb[1].mxu0 }
 0x11a   :  { %v6671_v18 = vadd.f32 %v548_v17, %v130_v14 }
 0x120   :  { %v889_v19 = vpop.f32.mrb[2].mxu0 }
 0x121   :  { %v890_v20 = vadd.f32 %v889_v19, %v813_v10  ;;  %v5403_v21 = vpop.f32.mrb[3].mxu0 }
 0x123   :  { %v973_v22 = vadd.f32 %v972_v12, %v890_v20 }
 0x128   :  { %v1047_v23 = vpop.f32.mrb[4].mxu0 }
 0x129   :  { %v1048_v24 = vadd.f32 %v1047_v23, %v973_v22  ;;  %v5425_v25 = vpop.f32.mrb[5].mxu0 }
 0x12b   :  { %v1051_v27 = vadd.f32 %v6671_v18, %v1048_v24 }
 0x12d   :  { %6392 = vtanh.f32 %v1051_v27 }
 0x137   :  { %v6393_v28 = vpop.eup %6392 }
 0x138   :  { %v1054_v29 = vsel %vm562_vm2, %v6393_v28, 0 }
 0x139   :  { %v1125_v30 = vand.u32 4294901760, %v1054_v29 }
 0x13b   :  { %v1126_v32 = vsub.f32 %v1054_v29, %v1125_v30 }
 0x13d   :  { %v1127_v33 = vand.u32 4294901760, %v1126_v32 }
 0x13f   :  { %v1128_v34 = vsub.f32 %v1126_v32, %v1127_v33 }
 0x141   :  { %v1129_v35 = vand.u32 4294901760, %v1128_v34 }
 0x143   :  { %5435 = vmatmul.mubr.f32.vlgmr.msra.gmra.mrb[10].mxu1 %v1129_v35 }
 0x144   :  { %6022 = vmatpush3.bf16.msra.mxu1 %v6590_v55  ;;  %5445 = vmatprep.mubr.msk.f32.mxu1 %vm6460_vm1, %v6461_v54 }
 0x145   :  { %6023 = vmatprep.subr.bf16.mxu1 %v6459_v31 }
 0x148   :  { %6025 = vmatpush3.bf16.msra.mxu1 %v6597_v58 }
 0x149   :  { %6026 = vmatprep.subr.bf16.mxu1 %v6459_v31 }
 0x14b   :  { %5446 = vmatmul.mubr.f32.vlgmr.msra.gmra.mrb[10].mxu1 %v1125_v30 }
 0x14c   :  { %6028 = vmatpush3.bf16.msra.mxu1 %v6607_v60  ;;  %5456 = vmatprep.mubr.msk.f32.mxu1 %vm6460_vm1, %v6461_v54 }
 0x14d   :  { %6029 = vmatprep.subr.bf16.mxu1 %v6459_v31 }
 0x150   :  { %6031 = vmatpush3.bf16.msra.mxu1 %v6614_v61 }
 0x151   :  { %6032 = vmatprep.subr.bf16.mxu1 %v6459_v31 }
 0x153   :  { %5457 = vmatmul.mubr.f32.vlgmr.msra.gmra.mrb[10].mxu1 %v1126_v32 }
 0x154   :  { %6034 = vmatpush3.bf16.msra.mxu1 %v6556_v26  ;;  %5467 = vmatprep.mubr.msk.f32.mxu1 %vm6460_vm1, %v6461_v54 }
 0x155   :  { %6035 = vmatprep.subr.bf16.mxu1 %v6459_v31 }
 0x158   :  { %6037 = vmatpush3.bf16.msra.mxu1 %v6580_v49 }
 0x159   :  { %6038 = vmatprep.subr.bf16.mxu1 %v6459_v31 }
 0x15b   :  { %5468 = vmatmul.mubr.f32.vlgmr.msra.gmra.mrb[10].mxu1 %v1127_v33 }
 0x15c   :  { %6040 = vmatpush3.bf16.msra.mxu1 %v6620_v62  ;;  %5478 = vmatprep.mubr.msk.f32.mxu1 %vm6460_vm1, %v6461_v54 }
 0x15d   :  { %6041 = vmatprep.subr.bf16.mxu1 %v6459_v31 }
 0x160   :  { %6043 = vmatpush3.bf16.msra.mxu1 %v6630_v63 }
 0x161   :  { %6044 = vmatprep.subr.bf16.mxu1 %v6459_v31 }
 0x163   :  { %5479 = vmatmul.mubr.f32.vlgmr.msra.gmra.mrb[10].mxu1 %v1125_v30 }
 0x164   :  { %6046 = vmatpush3.bf16.msra.mxu1 %v6556_v26  ;;  %5489 = vmatprep.mubr.msk.f32.mxu1 %vm6460_vm1, %v6461_v54 }
 0x165   :  { %6047 = vmatprep.subr.bf16.mxu1 %v6459_v31 }
 0x168   :  { %6049 = vmatpush3.bf16.msra.mxu1 %v6580_v49 }
 0x169   :  { %6086 = vmatprep.subr.bf16.mxu1 %v6459_v31 }
 0x16b   :  { %5490 = vmatmul.mubr.f32.vlgmr.msra.gmra.mrb[10].mxu1 %v1125_v30 }
 0x16c   :  { %6088 = vmatpush3.bf16.msra.mxu1 %v6556_v26  ;;  %5566 = vmatprep.mubr.msk.f32.mxu1 %vm6460_vm1, %v6461_v54 }
 0x16d   :  { %6089 = vmatprep.subr.bf16.mxu1 %v6459_v31 }
 0x170   :  { %6091 = vmatpush3.bf16.msra.mxu1 %v6580_v49 }
 0x171   :  { %6092 = vmatprep.subr.bf16.mxu1 %v6459_v31 }
 0x23e   :  { %v1537_v36 = vpop.f32.mrb[10].mxu1 }
 0x23f   :  { %v1542_v37 = vrot.slane %v1537_v36, 6  ;;  %v5491_v38 = vpop.f32.mrb[11].mxu1 }
 0x241   :  { %v1544_v39 = vadd.f32 %v6671_v18, %v1542_v37 }
 0x243   :  { %6394 = vtanh.f32 %v1544_v39 }
 0x24d   :  { %v6395_v40 = vpop.eup %6394 }
 0x24e   :  { %v1547_v41 = vrot.slane %v6395_v40, 2 }
 0x250   :  { %v1548_v42 = vsel %vm562_vm2, %v1547_v41, 0 }
 0x251   :  { %v1619_v43 = vand.u32 4294901760, %v1548_v42 }
 0x253   :  { %v1620_v44 = vsub.f32 %v1548_v42, %v1619_v43 }
 0x255   :  { %v1621_v45 = vand.u32 4294901760, %v1620_v44 }
 0x257   :  { %v1622_v46 = vsub.f32 %v1620_v44, %v1621_v45 }
 0x259   :  { %v1623_v47 = vand.u32 4294901760, %v1622_v46 }
 0x25b   :  { %5501 = vmatmul.mubr.f32.vlgmr.msra.gmra.mrb[6].mxu0 %v1623_v47 }
 0x25c   :  { %6058 = vmatpush3.bf16.msra.mxu0 %v6590_v55  ;;  %5511 = vmatprep.mubr.msk.f32.mxu0 %vm6460_vm1, %v6461_v54 }
 0x25d   :  { %6059 = vmatprep.subr.bf16.mxu0 %v6459_v31 }
 0x260   :  { %6061 = vmatpush3.bf16.msra.mxu0 %v6597_v58 }
 0x261   :  { %6062 = vmatprep.subr.bf16.mxu0 %v6459_v31 }
 0x263   :  { %5512 = vmatmul.mubr.f32.vlgmr.msra.gmra.mrb[6].mxu0 %v1619_v43 }
 0x264   :  { %6064 = vmatpush3.bf16.msra.mxu0 %v6607_v60  ;;  %5522 = vmatprep.mubr.msk.f32.mxu0 %vm6460_vm1, %v6461_v54 }
 0x265   :  { %6065 = vmatprep.subr.bf16.mxu0 %v6459_v31 }
 0x268   :  { %6067 = vmatpush3.bf16.msra.mxu0 %v6614_v61 }
 0x269   :  { %6068 = vmatprep.subr.bf16.mxu0 %v6459_v31 }
 0x26b   :  { %5523 = vmatmul.mubr.f32.vlgmr.msra.gmra.mrb[6].mxu0 %v1620_v44 }
 0x26c   :  { %6070 = vmatpush3.bf16.msra.mxu0 %v6556_v26  ;;  %5533 = vmatprep.mubr.msk.f32.mxu0 %vm6460_vm1, %v6461_v54 }
 0x26d   :  { %6071 = vmatprep.subr.bf16.mxu0 %v6459_v31 }
 0x270   :  { %6073 = vmatpush3.bf16.msra.mxu0 %v6580_v49 }
 0x271   :  { %6074 = vmatprep.subr.bf16.mxu0 %v6459_v31 }
 0x273   :  { %5534 = vmatmul.mubr.f32.vlgmr.msra.gmra.mrb[6].mxu0 %v1621_v45 }
 0x274   :  { %6076 = vmatpush3.bf16.msra.mxu0 %v6620_v62  ;;  %5544 = vmatprep.mubr.msk.f32.mxu0 %vm6460_vm1, %v6461_v54 }
 0x275   :  { %6077 = vmatprep.subr.bf16.mxu0 %v6459_v31 }
 0x278   :  { %6079 = vmatpush3.bf16.msra.mxu0 %v6630_v63 }
 0x279   :  { %6080 = vmatprep.subr.bf16.mxu0 %v6459_v31 }
 0x27b   :  { %5545 = vmatmul.mubr.f32.vlgmr.msra.gmra.mrb[6].mxu0 %v1619_v43 }
 0x27c   :  { %6082 = vmatpush3.bf16.msra.mxu0 %v6556_v26  ;;  %5555 = vmatprep.mubr.msk.f32.mxu0 %vm6460_vm1, %v6461_v54 }
 0x27d   :  { %6083 = vmatprep.subr.bf16.mxu0 %v6459_v31 }
 0x280   :  { %6085 = vmatpush3.bf16.msra.mxu0 %v6580_v49 }
 0x281   :  { %6122 = vmatprep.subr.bf16.mxu0 %v6459_v31 }
 0x283   :  { %5556 = vmatmul.mubr.f32.vlgmr.msra.gmra.mrb[6].mxu0 %v1619_v43 }
 0x284   :  { %6124 = vmatpush3.bf16.msra.mxu0 %v6556_v26  ;;  %5632 = vmatprep.mubr.msk.f32.mxu0 %vm6460_vm1, %v6461_v54 }
 0x285   :  { %6125 = vmatprep.subr.bf16.mxu0 %v6459_v31 }
 0x288   :  { %6127 = vmatpush3.bf16.msra.mxu0 %v6580_v49 }
 0x289   :  { %6128 = vmatprep.subr.bf16.mxu0 %v6459_v31 }
 0x356   :  { %v2031_v48 = vpop.f32.mrb[6].mxu0 }
 0x357   :  { %v2036_v50 = vrot.slane %v2031_v48, 4  ;;  %v5557_v51 = vpop.f32.mrb[7].mxu0 }
 0x359   :  { %v2038_v52 = vadd.f32 %v6671_v18, %v2036_v50 }
 0x35b   :  { %6396 = vtanh.f32 %v2038_v52 }
 0x365   :  { %v6397_v53 = vpop.eup %6396 }
 0x366   :  { %v2041_v56 = vrot.slane %v6397_v53, 4 }
 0x368   :  { %v2042_v57 = vsel %vm562_vm2, %v2041_v56, 0 }
 0x369   :  { %v2113_v59 = vand.u32 4294901760, %v2042_v57 }
 0x36b   :  { %v2114_v0 = vsub.f32 %v2042_v57, %v2113_v59 }
 0x36d   :  { %v2115_v1 = vand.u32 4294901760, %v2114_v0 }
 0x36f   :  { %v2116_v2 = vsub.f32 %v2114_v0, %v2115_v1 }
 0x371   :  { %v2117_v3 = vand.u32 4294901760, %v2116_v2 }
 0x373   :  { %5567 = vmatmul.mubr.f32.vlgmr.msra.gmra.mrb[12].mxu1 %v2117_v3 }
 0x374   :  { %6094 = vmatpush3.bf16.msra.mxu1 %v6590_v55  ;;  %5577 = vmatprep.mubr.msk.f32.mxu1 %vm6460_vm1, %v6461_v54 }
 0x375   :  { %6095 = vmatprep.subr.bf16.mxu1 %v6459_v31 }
 0x378   :  { %6097 = vmatpush3.bf16.msra.mxu1 %v6597_v58 }
 0x379   :  { %6098 = vmatprep.subr.bf16.mxu1 %v6459_v31 }
 0x37b   :  { %5578 = vmatmul.mubr.f32.vlgmr.msra.gmra.mrb[12].mxu1 %v2113_v59 }
 0x37c   :  { %6100 = vmatpush3.bf16.msra.mxu1 %v6607_v60  ;;  %5588 = vmatprep.mubr.msk.f32.mxu1 %vm6460_vm1, %v6461_v54 }
 0x37d   :  { %6101 = vmatprep.subr.bf16.mxu1 %v6459_v31 }
 0x380   :  { %6103 = vmatpush3.bf16.msra.mxu1 %v6614_v61 }
 0x381   :  { %6104 = vmatprep.subr.bf16.mxu1 %v6459_v31 }
 0x383   :  { %5589 = vmatmul.mubr.f32.vlgmr.msra.gmra.mrb[12].mxu1 %v2114_v0 }
 0x384   :  { %6106 = vmatpush3.bf16.msra.mxu1 %v6556_v26  ;;  %5599 = vmatprep.mubr.msk.f32.mxu1 %vm6460_vm1, %v6461_v54 }
 0x385   :  { %6107 = vmatprep.subr.bf16.mxu1 %v6459_v31 }
 0x388   :  { %6109 = vmatpush3.bf16.msra.mxu1 %v6580_v49 }
 0x389   :  { %6110 = vmatprep.subr.bf16.mxu1 %v6459_v31 }
 0x38b   :  { %5600 = vmatmul.mubr.f32.vlgmr.msra.gmra.mrb[12].mxu1 %v2115_v1 }
 0x38c   :  { %6112 = vmatpush3.bf16.msra.mxu1 %v6620_v62  ;;  %5610 = vmatprep.mubr.msk.f32.mxu1 %vm6460_vm1, %v6461_v54 }
 0x38d   :  { %6113 = vmatprep.subr.bf16.mxu1 %v6459_v31 }
 0x390   :  { %6115 = vmatpush3.bf16.msra.mxu1 %v6630_v63 }
 0x391   :  { %6116 = vmatprep.subr.bf16.mxu1 %v6459_v31 }
 0x393   :  { %5611 = vmatmul.mubr.f32.vlgmr.msra.gmra.mrb[12].mxu1 %v2113_v59 }
 0x394   :  { %6118 = vmatpush3.bf16.msra.mxu1 %v6556_v26  ;;  %5621 = vmatprep.mubr.msk.f32.mxu1 %vm6460_vm1, %v6461_v54 }
 0x395   :  { %6119 = vmatprep.subr.bf16.mxu1 %v6459_v31 }
 0x398   :  { %6121 = vmatpush3.bf16.msra.mxu1 %v6580_v49 }
 0x399   :  { %6158 = vmatprep.subr.bf16.mxu1 %v6459_v31 }
 0x39b   :  { %5622 = vmatmul.mubr.f32.vlgmr.msra.gmra.mrb[12].mxu1 %v2113_v59 }
 0x39c   :  { %6160 = vmatpush3.bf16.msra.mxu1 %v6556_v26  ;;  %5698 = vmatprep.mubr.msk.f32.mxu1 %vm6460_vm1, %v6461_v54 }
 0x39d   :  { %6161 = vmatprep.subr.bf16.mxu1 %v6459_v31 }
 0x3a0   :  { %6163 = vmatpush3.bf16.msra.mxu1 %v6580_v49 }
 0x3a1   :  { %6164 = vmatprep.subr.bf16.mxu1 %v6459_v31 }
 0x46e   :  { %v2525_v4 = vpop.f32.mrb[12].mxu1 }
 0x46f   :  { %v2530_v5 = vrot.slane %v2525_v4, 2  ;;  %v5623_v6 = vpop.f32.mrb[13].mxu1 }
 0x471   :  { %v2532_v7 = vadd.f32 %v6671_v18, %v2530_v5 }
 0x473   :  { %6398 = vtanh.f32 %v2532_v7 }
 0x47d   :  { %v6399_v8 = vpop.eup %6398 }
 0x47e   :  { %v2535_v9 = vrot.slane %v6399_v8, 6 }
 0x480   :  { %v2536_v10 = vsel %vm562_vm2, %v2535_v9, 0 }
 0x481   :  { %v2607_v11 = vand.u32 4294901760, %v2536_v10 }
 0x483   :  { %v2608_v12 = vsub.f32 %v2536_v10, %v2607_v11 }
 0x485   :  { %v2609_v13 = vand.u32 4294901760, %v2608_v12 }
 0x487   :  { %v2610_v14 = vsub.f32 %v2608_v12, %v2609_v13 }
 0x489   :  { %v2611_v15 = vand.u32 4294901760, %v2610_v14  ;;  %v4509_v14 = vld [vmem:[#allocation2 + $0x18] sm:$0xff] }
 0x48b   :  { %5633 = vmatmul.mubr.f32.vlgmr.msra.gmra.mrb[8].mxu0 %v2611_v15  ;;  %v4531_v15 = vand.u32 4294901760, %v4509_v14 }
 0x48c   :  { %6130 = vmatpush3.bf16.msra.mxu0 %v6590_v55  ;;  %5643 = vmatprep.mubr.msk.f32.mxu0 %vm6460_vm1, %v6461_v54 }
 0x48d   :  { %6131 = vmatprep.subr.bf16.mxu0 %v6459_v31 }
 0x490   :  { %6133 = vmatpush3.bf16.msra.mxu0 %v6597_v58 }
 0x491   :  { %6134 = vmatprep.subr.bf16.mxu0 %v6459_v31 }
 0x493   :  { %5644 = vmatmul.mubr.f32.vlgmr.msra.gmra.mrb[10].mxu0 %v2607_v11 }
 0x494   :  { %6136 = vmatpush3.bf16.msra.mxu0 %v6607_v60  ;;  %5654 = vmatprep.mubr.msk.f32.mxu0 %vm6460_vm1, %v6461_v54 }
 0x495   :  { %6137 = vmatprep.subr.bf16.mxu0 %v6459_v31 }
 0x498   :  { %6139 = vmatpush3.bf16.msra.mxu0 %v6614_v61 }
 0x499   :  { %6140 = vmatprep.subr.bf16.mxu0 %v6459_v31 }
 0x49b   :  { %5655 = vmatmul.mubr.f32.vlgmr.msra.gmra.mrb[12].mxu0 %v2608_v12 }
 0x49c   :  { %6142 = vmatpush3.bf16.msra.mxu0 %v6556_v26  ;;  %5665 = vmatprep.mubr.msk.f32.mxu0 %vm6460_vm1, %v6461_v54 }
 0x49d   :  { %6143 = vmatprep.subr.bf16.mxu0 %v6459_v31 }
 0x4a0   :  { %6145 = vmatpush3.bf16.msra.mxu0 %v6580_v49 }
 0x4a1   :  { %6146 = vmatprep.subr.bf16.mxu0 %v6459_v31 }
 0x4a3   :  { %5666 = vmatmul.mubr.f32.vlgmr.msra.gmra.mrb[14].mxu0 %v2609_v13  ;;  %v4508_v13 = vld [vmem:[#allocation2 + $0x10] sm:$0xff] }
 0x4a4   :  { %6148 = vmatpush3.bf16.msra.mxu0 %v6620_v62  ;;  %5676 = vmatprep.mubr.msk.f32.mxu0 %vm6460_vm1, %v6461_v54 }
 0x4a5   :  { %6149 = vmatprep.subr.bf16.mxu0 %v6459_v31 }
 0x4a8   :  { %6151 = vmatpush3.bf16.msra.mxu0 %v6630_v63 }
 0x4a9   :  { %6152 = vmatprep.subr.bf16.mxu0 %v6459_v31 }
 0x4ab   :  { %5677 = vmatmul.mubr.f32.vlgmr.msra.gmra.mrb[16].mxu0 %v2607_v11 }
 0x4ac   :  { %6154 = vmatpush3.bf16.msra.mxu0 %v6556_v26  ;;  %5687 = vmatprep.mubr.msk.f32.mxu0 %vm6460_vm1, %v6461_v54 }
 0x4ad   :  { %6155 = vmatprep.subr.bf16.mxu0 %v6459_v31 }
 0x4b0   :  { %6157 = vmatpush3.bf16.msra.mxu0 %v6580_v49 }
 0x4b1   :  { %6194 = vmatprep.subr.bf16.mxu0 %v6459_v31 }
 0x4b3   :  { %5688 = vmatmul.mubr.f32.vlgmr.msra.gmra.mrb[18].mxu0 %v2607_v11 }
 0x4b4   :  { %6196 = vmatpush3.bf16.msra.mxu0 %v6556_v26  ;;  %5764 = vmatprep.mubr.msk.f32.mxu0 %vm6460_vm1, %v6461_v54 }
 0x4b5   :  { %6197 = vmatprep.subr.bf16.mxu0 %v6459_v31 }
 0x4b8   :  { %6199 = vmatpush3.bf16.msra.mxu0 %v6580_v49 }
 0x4b9   :  { %6200 = vmatprep.subr.bf16.mxu0 %v6459_v31 }
 0x55e   :  { %v2613_v17 = vpop.f32.mrb[8].mxu0 }
 0x55f   :  { %v5634_v18 = vpop.f32.mrb[9].mxu0 }
 0x566   :  { %v2704_v19 = vpop.f32.mrb[10].mxu0 }
 0x567   :  { %v2705_v20 = vadd.f32 %v2704_v19, %v2613_v17  ;;  %v5645_v21 = vpop.f32.mrb[11].mxu0 }
 0x56e   :  { %v2784_v22 = vpop.f32.mrb[12].mxu0 }
 0x56f   :  { %v2785_v23 = vadd.f32 %v2784_v22, %v2705_v20  ;;  %v5656_v24 = vpop.f32.mrb[13].mxu0  ;;  %v4623_v20 = vsub.f32 %v4509_v14, %v4531_v15 }
 0x576   :  { %v2861_v25 = vpop.f32.mrb[14].mxu0 }
 0x577   :  { %v2862_v27 = vadd.f32 %v2861_v25, %v2785_v23  ;;  %v5667_v28 = vpop.f32.mrb[15].mxu0  ;;  %v4624_v25 = vand.u32 4294901760, %v4623_v20 }
 0x57e   :  { %v2944_v29 = vpop.f32.mrb[16].mxu0 }
 0x57f   :  { %v2945_v30 = vadd.f32 %v2944_v29, %v2862_v27  ;;  %v5678_v32 = vpop.f32.mrb[17].mxu0  ;;  %v4625_v29 = vsub.f32 %v4623_v20, %v4624_v25 }
 0x586   :  { %v3019_v33 = vpop.f32.mrb[18].mxu0 }
 0x587   :  { %v3020_v34 = vadd.f32 %v3019_v33, %v2945_v30  ;;  %v5689_v35 = vpop.f32.mrb[19].mxu0  ;;  %v4626_v33 = vand.u32 4294901760, %v4625_v29 }
 0x589   :  { %v3023_v36 = vadd.f32 %v6669_v16, %v3020_v34 }
 0x58b   :  { %6400 = vtanh.f32 %v3023_v36 }
 0x595   :  { %v6401_v37 = vpop.eup %6400 }
 0x596   :  { %v3026_v38 = vsel %vm562_vm2, %v6401_v37, 0 }
 0x597   :  { %v3097_v39 = vand.u32 4294901760, %v3026_v38 }
 0x599   :  { %v3098_v40 = vsub.f32 %v3026_v38, %v3097_v39 }
 0x59b   :  { %v3099_v41 = vand.u32 4294901760, %v3098_v40 }
 0x59d   :  { %v3100_v42 = vsub.f32 %v3098_v40, %v3099_v41 }
 0x59f   :  { %v3101_v43 = vand.u32 4294901760, %v3100_v42 }
 0x5a1   :  { %5699 = vmatmul.mubr.f32.vlgmr.msra.gmra.mrb[14].mxu1 %v3101_v43 }
 0x5a2   :  { %6166 = vmatpush3.bf16.msra.mxu1 %v6590_v55  ;;  %5709 = vmatprep.mubr.msk.f32.mxu1 %vm6460_vm1, %v6461_v54 }
 0x5a3   :  { %6167 = vmatprep.subr.bf16.mxu1 %v6459_v31 }
 0x5a6   :  { %6169 = vmatpush3.bf16.msra.mxu1 %v6597_v58 }
 0x5a7   :  { %6170 = vmatprep.subr.bf16.mxu1 %v6459_v31 }
 0x5a9   :  { %5710 = vmatmul.mubr.f32.vlgmr.msra.gmra.mrb[14].mxu1 %v3097_v39 }
 0x5aa   :  { %6172 = vmatpush3.bf16.msra.mxu1 %v6607_v60  ;;  %5720 = vmatprep.mubr.msk.f32.mxu1 %vm6460_vm1, %v6461_v54 }
 0x5ab   :  { %6173 = vmatprep.subr.bf16.mxu1 %v6459_v31 }
 0x5ae   :  { %6175 = vmatpush3.bf16.msra.mxu1 %v6614_v61 }
 0x5af   :  { %6176 = vmatprep.subr.bf16.mxu1 %v6459_v31 }
 0x5b1   :  { %5721 = vmatmul.mubr.f32.vlgmr.msra.gmra.mrb[14].mxu1 %v3098_v40 }
 0x5b2   :  { %6178 = vmatpush3.bf16.msra.mxu1 %v6556_v26  ;;  %5731 = vmatprep.mubr.msk.f32.mxu1 %vm6460_vm1, %v6461_v54 }
 0x5b3   :  { %6179 = vmatprep.subr.bf16.mxu1 %v6459_v31 }
 0x5b6   :  { %6181 = vmatpush3.bf16.msra.mxu1 %v6580_v49 }
 0x5b7   :  { %6182 = vmatprep.subr.bf16.mxu1 %v6459_v31 }
 0x5b9   :  { %5732 = vmatmul.mubr.f32.vlgmr.msra.gmra.mrb[14].mxu1 %v3099_v41 }
 0x5ba   :  { %6184 = vmatpush3.bf16.msra.mxu1 %v6620_v62  ;;  %5742 = vmatprep.mubr.msk.f32.mxu1 %vm6460_vm1, %v6461_v54 }
 0x5bb   :  { %6185 = vmatprep.subr.bf16.mxu1 %v6459_v31 }
 0x5be   :  { %6187 = vmatpush3.bf16.msra.mxu1 %v6630_v63 }
 0x5bf   :  { %6188 = vmatprep.subr.bf16.mxu1 %v6459_v31 }
 0x5c1   :  { %5743 = vmatmul.mubr.f32.vlgmr.msra.gmra.mrb[14].mxu1 %v3097_v39 }
 0x5c2   :  { %6190 = vmatpush3.bf16.msra.mxu1 %v6556_v26  ;;  %5753 = vmatprep.mubr.msk.f32.mxu1 %vm6460_vm1, %v6461_v54 }
 0x5c3   :  { %6191 = vmatprep.subr.bf16.mxu1 %v6459_v31 }
 0x5c6   :  { %6193 = vmatpush3.bf16.msra.mxu1 %v6580_v49 }
 0x5c7   :  { %6230 = vmatprep.subr.bf16.mxu1 %v6459_v31 }
 0x5c9   :  { %5754 = vmatmul.mubr.f32.vlgmr.msra.gmra.mrb[14].mxu1 %v3097_v39 }
 0x5ca   :  { %6232 = vmatpush3.bf16.msra.mxu1 %v6556_v26  ;;  %5830 = vmatprep.mubr.msk.f32.mxu1 %vm6460_vm1, %v6461_v54 }
 0x5cb   :  { %6233 = vmatprep.subr.bf16.mxu1 %v6459_v31 }
 0x5ce   :  { %6235 = vmatpush3.bf16.msra.mxu1 %v6580_v49 }
 0x5cf   :  { %6236 = vmatprep.subr.bf16.mxu1 %v6459_v31 }
 0x69c   :  { %v3509_v44 = vpop.f32.mrb[14].mxu1 }
 0x69d   :  { %v3514_v45 = vrot.slane %v3509_v44, 6  ;;  %v5755_v46 = vpop.f32.mrb[15].mxu1 }
 0x69f   :  { %v3516_v47 = vadd.f32 %v6669_v16, %v3514_v45 }
 0x6a1   :  { %6402 = vtanh.f32 %v3516_v47 }
 0x6ab   :  { %v6403_v48 = vpop.eup %6402 }
 0x6ac   :  { %v3519_v50 = vrot.slane %v6403_v48, 2 }
 0x6ae   :  { %v3520_v51 = vsel %vm562_vm2, %v3519_v50, 0 }
 0x6af   :  { %v3591_v52 = vand.u32 4294901760, %v3520_v51 }
 0x6b1   :  { %v3592_v53 = vsub.f32 %v3520_v51, %v3591_v52 }
 0x6b3   :  { %v3593_v56 = vand.u32 4294901760, %v3592_v53 }
 0x6b5   :  { %v3594_v57 = vsub.f32 %v3592_v53, %v3593_v56 }
 0x6b7   :  { %v3595_v59 = vand.u32 4294901760, %v3594_v57 }
 0x6b9   :  { %5765 = vmatmul.mubr.f32.vlgmr.msra.gmra.mrb[20].mxu0 %v3595_v59 }
 0x6ba   :  { %6202 = vmatpush3.bf16.msra.mxu0 %v6590_v55  ;;  %5775 = vmatprep.mubr.msk.f32.mxu0 %vm6460_vm1, %v6461_v54 }
 0x6bb   :  { %6203 = vmatprep.subr.bf16.mxu0 %v6459_v31 }
 0x6be   :  { %6205 = vmatpush3.bf16.msra.mxu0 %v6597_v58 }
 0x6bf   :  { %6206 = vmatprep.subr.bf16.mxu0 %v6459_v31 }
 0x6c1   :  { %5776 = vmatmul.mubr.f32.vlgmr.msra.gmra.mrb[20].mxu0 %v3591_v52 }
 0x6c2   :  { %6208 = vmatpush3.bf16.msra.mxu0 %v6607_v60  ;;  %5786 = vmatprep.mubr.msk.f32.mxu0 %vm6460_vm1, %v6461_v54 }
 0x6c3   :  { %6209 = vmatprep.subr.bf16.mxu0 %v6459_v31 }
 0x6c6   :  { %6211 = vmatpush3.bf16.msra.mxu0 %v6614_v61 }
 0x6c7   :  { %6212 = vmatprep.subr.bf16.mxu0 %v6459_v31 }
 0x6c9   :  { %5787 = vmatmul.mubr.f32.vlgmr.msra.gmra.mrb[20].mxu0 %v3592_v53 }
 0x6ca   :  { %6214 = vmatpush3.bf16.msra.mxu0 %v6556_v26  ;;  %5797 = vmatprep.mubr.msk.f32.mxu0 %vm6460_vm1, %v6461_v54 }
 0x6cb   :  { %6215 = vmatprep.subr.bf16.mxu0 %v6459_v31 }
 0x6ce   :  { %6217 = vmatpush3.bf16.msra.mxu0 %v6580_v49 }
 0x6cf   :  { %6218 = vmatprep.subr.bf16.mxu0 %v6459_v31 }
 0x6d1   :  { %5798 = vmatmul.mubr.f32.vlgmr.msra.gmra.mrb[20].mxu0 %v3593_v56 }
 0x6d2   :  { %6220 = vmatpush3.bf16.msra.mxu0 %v6620_v62  ;;  %5808 = vmatprep.mubr.msk.f32.mxu0 %vm6460_vm1, %v6461_v54 }
 0x6d3   :  { %6221 = vmatprep.subr.bf16.mxu0 %v6459_v31 }
 0x6d6   :  { %6223 = vmatpush3.bf16.msra.mxu0 %v6630_v63 }
 0x6d7   :  { %6224 = vmatprep.subr.bf16.mxu0 %v6459_v31 }
 0x6d9   :  { %5809 = vmatmul.mubr.f32.vlgmr.msra.gmra.mrb[20].mxu0 %v3591_v52 }
 0x6da   :  { %6226 = vmatpush3.bf16.msra.mxu0 %v6556_v26  ;;  %5819 = vmatprep.mubr.msk.f32.mxu0 %vm6460_vm1, %v6461_v54 }
 0x6db   :  { %6227 = vmatprep.subr.bf16.mxu0 %v6459_v31 }
 0x6de   :  { %6229 = vmatpush3.bf16.msra.mxu0 %v6580_v49 }
 0x6df   :  { %6266 = vmatprep.subr.bf16.mxu0 %v6459_v31 }
 0x6e1   :  { %5820 = vmatmul.mubr.f32.vlgmr.msra.gmra.mrb[20].mxu0 %v3591_v52 }
 0x6e2   :  { %5896 = vmatprep.mubr.msk.f32.mxu0 %vm6460_vm1, %v6461_v54 }
 0x7b4   :  { %v4003_v0 = vpop.f32.mrb[20].mxu0 }
 0x7b5   :  { %v4008_v1 = vrot.slane %v4003_v0, 4  ;;  %v5821_v2 = vpop.f32.mrb[21].mxu0 }
 0x7b7   :  { %v4010_v3 = vadd.f32 %v6669_v16, %v4008_v1 }
 0x7b9   :  { %6404 = vtanh.f32 %v4010_v3 }
 0x7c3   :  { %v6405_v4 = vpop.eup %6404 }
 0x7c4   :  { %v4013_v5 = vrot.slane %v6405_v4, 4 }
 0x7c6   :  { %v4014_v6 = vsel %vm562_vm2, %v4013_v5, 0 }
 0x7c7   :  { %v4085_v7 = vand.u32 4294901760, %v4014_v6 }
 0x7c9   :  { %v4086_v8 = vsub.f32 %v4014_v6, %v4085_v7 }
 0x7cb   :  { %v4087_v9 = vand.u32 4294901760, %v4086_v8 }
 0x7cd   :  { %v4088_v10 = vsub.f32 %v4086_v8, %v4087_v9 }
 0x7cf   :  { %v4089_v11 = vand.u32 4294901760, %v4088_v10 }
 0x7d1   :  { %5831 = vmatmul.mubr.f32.vlgmr.msra.gmra.mrb[16].mxu1 %v4089_v11 }
 0x7d2   :  { %6238 = vmatpush3.bf16.msra.mxu1 %v6590_v55  ;;  %5841 = vmatprep.mubr.msk.f32.mxu1 %vm6460_vm1, %v6461_v54  ;;  %v4506_v55 = vld [vmem:[#allocation2] sm:$0xff] }
 0x7d3   :  { %6239 = vmatprep.subr.bf16.mxu1 %v6459_v31 }
 0x7d6   :  { %6241 = vmatpush3.bf16.msra.mxu1 %v6597_v58  ;;  %v4507_v58 = vld [vmem:[#allocation2 + $0x8] sm:$0xff] }
 0x7d7   :  { %6242 = vmatprep.subr.bf16.mxu1 %v6459_v31 }
 0x7d9   :  { %5842 = vmatmul.mubr.f32.vlgmr.msra.gmra.mrb[16].mxu1 %v4085_v7 }
 0x7da   :  { %6244 = vmatpush3.bf16.msra.mxu1 %v6607_v60  ;;  %5852 = vmatprep.mubr.msk.f32.mxu1 %vm6460_vm1, %v6461_v54  ;;  %v4522_v60 = vand.u32 4294901760, %v4506_v55 }
 0x7db   :  { %6245 = vmatprep.subr.bf16.mxu1 %v6459_v31 }
 0x7de   :  { %6247 = vmatpush3.bf16.msra.mxu1 %v6614_v61  ;;  %v4525_v61 = vand.u32 4294901760, %v4507_v58 }
 0x7df   :  { %6248 = vmatprep.subr.bf16.mxu1 %v6459_v31 }
 0x7e0   :  { %v4609_v12 = vsub.f32 %v4507_v58, %v4525_v61 }
 0x7e1   :  { %5853 = vmatmul.mubr.f32.vlgmr.msra.gmra.mrb[16].mxu1 %v4086_v8 }
 0x7e2   :  { %6250 = vmatpush3.bf16.msra.mxu1 %v6556_v26  ;;  %5863 = vmatprep.mubr.msk.f32.mxu1 %vm6460_vm1, %v6461_v54  ;;  %v4610_v18 = vand.u32 4294901760, %v4609_v12 }
 0x7e3   :  { %6251 = vmatprep.subr.bf16.mxu1 %v6459_v31 }
 0x7e4   :  { %v4611_v22 = vsub.f32 %v4609_v12, %v4610_v18 }
 0x7e6   :  { %6253 = vmatpush3.bf16.msra.mxu1 %v6580_v49  ;;  %v4612_v27 = vand.u32 4294901760, %v4611_v22 }
 0x7e7   :  { %6254 = vmatprep.subr.bf16.mxu1 %v6459_v31 }
 0x7e9   :  { %5864 = vmatmul.mubr.f32.vlgmr.msra.gmra.mrb[16].mxu1 %v4087_v9 }
 0x7ea   :  { %6256 = vmatpush3.bf16.msra.mxu1 %v6620_v62  ;;  %5874 = vmatprep.mubr.msk.f32.mxu1 %vm6460_vm1, %v6461_v54  ;;  %v6928_v62 = vpack.c.bf16 %v4525_v61, %v4522_v60 }
 0x7eb   :  { %6257 = vmatprep.subr.bf16.mxu1 %v6459_v31 }
 0x7ec   :  { %6268 = vmatpush3.bf16.msra.mxu0 %v6928_v62 }
 0x7ed   :  { %6269 = vmatprep.subr.bf16.mxu0 %v6459_v31 }
 0x7ee   :  { %6259 = vmatpush3.bf16.msra.mxu1 %v6630_v63  ;;  %v4602_v63 = vsub.f32 %v4506_v55, %v4522_v60 }
 0x7ef   :  { %6260 = vmatprep.subr.bf16.mxu1 %v6459_v31 }
 0x7f0   :  { %v4603_v17 = vand.u32 4294901760, %v4602_v63  ;;  %v6279_v35 = vpack.c.bf16 %v4609_v12, %v4602_v63 }
 0x7f1   :  { %5875 = vmatmul.mubr.f32.vlgmr.msra.gmra.mrb[16].mxu1 %v4085_v7 }
 0x7f2   :  { %6262 = vmatpush3.bf16.msra.mxu1 %v6556_v26  ;;  %5885 = vmatprep.mubr.msk.f32.mxu1 %vm6460_vm1, %v6461_v54  ;;  %v4528_v26 = vand.u32 4294901760, %v4508_v13  ;;  %v4604_v21 = vsub.f32 %v4602_v63, %v4603_v17  ;;  %v6291_v37 = vpack.c.bf16 %v4610_v18, %v4603_v17 }
 0x7f3   :  { %6263 = vmatprep.subr.bf16.mxu1 %v6459_v31 }
 0x7f4   :  { %v4616_v19 = vsub.f32 %v4508_v13, %v4528_v26  ;;  %v4605_v23 = vand.u32 4294901760, %v4604_v21 }
 0x7f6   :  { %6265 = vmatpush3.bf16.msra.mxu1 %v6580_v49  ;;  %v6270_v49 = vpack.c.bf16 %v4531_v15, %v4528_v26  ;;  %v4617_v24 = vand.u32 4294901760, %v4616_v19  ;;  %v6273_v30 = vpack.c.bf16 %v4612_v27, %v4605_v23  ;;  %v6282_v36 = vpack.c.bf16 %v4623_v20, %v4616_v19 }
 0x7f8   :  { %6271 = vmatpush3.bf16.msra.mxu0 %v6270_v49  ;;  %v4618_v28 = vsub.f32 %v4616_v19, %v4617_v24  ;;  %v6294_v38 = vpack.c.bf16 %v4624_v25, %v4617_v24 }
 0x7f9   :  { %5886 = vmatmul.mubr.f32.vlgmr.msra.gmra.mrb[16].mxu1 %v4085_v7  ;;  %6272 = vmatprep.subr.bf16.mxu0 %v6459_v31 }
 0x7fa   :  { %v4619_v32 = vand.u32 4294901760, %v4618_v28 }
 0x7fc   :  { %v6276_v34 = vpack.c.bf16 %v4626_v33, %v4619_v32 }
 0x8cc   :  { %v4497_v39 = vpop.f32.mrb[16].mxu1 }
 0x8cd   :  { %v4502_v40 = vrot.slane %v4497_v39, 2  ;;  %v5887_v41 = vpop.f32.mrb[17].mxu1 }
 0x8cf   :  { %v4504_v42 = vadd.f32 %v6669_v16, %v4502_v40  ;;  %v5023_v16 = vld [vmem:[%s6976_s5] ss:$0 sm:$0xff] }
 0x8d1   :  { %6406 = vtanh.f32 %v4504_v42 }
 0x8db   :  { %v6407_v43 = vpop.eup %6406 }
 0x8dc   :  { %v4518_v44 = vrot.slane %v6407_v43, 6 }
 0x8de   :  { %v4519_v45 = vsel %vm562_vm2, %v4518_v44, 0 }
 0x8df   :  { %v4590_v46 = vand.u32 4294901760, %v4519_v45 }
 0x8e1   :  { %v4591_v47 = vsub.f32 %v4519_v45, %v4590_v46 }
 0x8e3   :  { %v4592_v48 = vand.u32 4294901760, %v4591_v47 }
 0x8e5   :  { %v4593_v50 = vsub.f32 %v4591_v47, %v4592_v48 }
 0x8e7   :  { %v4594_v51 = vand.u32 4294901760, %v4593_v50 }
 0x8e9   :  { %5897 = vmatmul.mubr.f32.vlgmr.msra.gmra.mrb[22].mxu0 %v4594_v51 }
 0x8ea   :  { %6274 = vmatpush3.bf16.msra.mxu0 %v6273_v30  ;;  %5907 = vmatprep.mubr.msk.f32.mxu0 %vm6460_vm1, %v6461_v54 }
 0x8eb   :  { %6275 = vmatprep.subr.bf16.mxu0 %v6459_v31 }
 0x8ee   :  { %6277 = vmatpush3.bf16.msra.mxu0 %v6276_v34 }
 0x8ef   :  { %6278 = vmatprep.subr.bf16.mxu0 %v6459_v31 }
 0x8f1   :  { %5908 = vmatmul.mubr.f32.vlgmr.msra.gmra.mrb[22].mxu0 %v4590_v46 }
 0x8f2   :  { %6280 = vmatpush3.bf16.msra.mxu0 %v6279_v35  ;;  %5918 = vmatprep.mubr.msk.f32.mxu0 %vm6460_vm1, %v6461_v54 }
 0x8f3   :  { %6281 = vmatprep.subr.bf16.mxu0 %v6459_v31 }
 0x8f6   :  { %6283 = vmatpush3.bf16.msra.mxu0 %v6282_v36 }
 0x8f7   :  { %6284 = vmatprep.subr.bf16.mxu0 %v6459_v31 }
 0x8f9   :  { %5919 = vmatmul.mubr.f32.vlgmr.msra.gmra.mrb[22].mxu0 %v4591_v47 }
 0x8fa   :  { %6286 = vmatpush3.bf16.msra.mxu0 %v6928_v62  ;;  %5929 = vmatprep.mubr.msk.f32.mxu0 %vm6460_vm1, %v6461_v54 }
 0x8fb   :  { %6287 = vmatprep.subr.bf16.mxu0 %v6459_v31 }
 0x8fe   :  { %6289 = vmatpush3.bf16.msra.mxu0 %v6270_v49 }
 0x8ff   :  { %6290 = vmatprep.subr.bf16.mxu0 %v6459_v31 }
 0x901   :  { %5930 = vmatmul.mubr.f32.vlgmr.msra.gmra.mrb[22].mxu0 %v4592_v48 }
 0x902   :  { %6292 = vmatpush3.bf16.msra.mxu0 %v6291_v37  ;;  %5940 = vmatprep.mubr.msk.f32.mxu0 %vm6460_vm1, %v6461_v54 }
 0x903   :  { %6293 = vmatprep.subr.bf16.mxu0 %v6459_v31 }
 0x906   :  { %6295 = vmatpush3.bf16.msra.mxu0 %v6294_v38 }
 0x907   :  { %6296 = vmatprep.subr.bf16.mxu0 %v6459_v31 }
 0x909   :  { %5941 = vmatmul.mubr.f32.vlgmr.msra.gmra.mrb[22].mxu0 %v4590_v46 }
 0x90a   :  { %6298 = vmatpush3.bf16.msra.mxu0 %v6928_v62  ;;  %5951 = vmatprep.mubr.msk.f32.mxu0 %vm6460_vm1, %v6461_v54 }
 0x90b   :  { %6299 = vmatprep.subr.bf16.mxu0 %v6459_v31 }
 0x90e   :  { %6301 = vmatpush3.bf16.msra.mxu0 %v6270_v49 }
 0x911   :  { %5952 = vmatmul.mubr.f32.vlgmr.msra.gmra.mrb[22].mxu0 %v4590_v46 }
 0x9e4   :  { %v5002_v52 = vpop.f32.mrb[22].mxu0 }
 0x9e5   :  { %v6306_v53 = vadd.f32 %v5023_v16, %v5002_v52  ;;  %v5953_v56 = vpop.f32.mrb[23].mxu0 }
 0x9e7   :  { %5006 = vst [vmem:[#allocation5] sm:$0x3] %v6306_v53 }
 0x9e8   :  { %6441 = shalt.err (!%p6438_p12)
}
 0x9e9   :  { %s6442_s7 = scalar_lea.hbm %s6977_s6, 32 }
 0x9ea   :  { %p6443_p13 = scmp.ne.s32.totalorder %s6977_s6, %s6442_s7  ;;  %p6446_p0 = scmp.lt.u32.totalorder %s6442_s7, %s6977_s6 }
 0x9ec   :  { %p6448_p1 = pnand %p6446_p0, %p6443_p13 }
 0x9ee   :  { %6451 = shalt.err (!%p6448_p1)
}
 0x9ef   :  { %5016 = dma.vmem_to_hbm [thread:$0]  %s5014_s27, 32, %s6977_s6, [#allocation4]  }
 0x9f0   :  { %6454 = dma.done.wait [#allocation4], 32  }
 0x9f1   :  { %6455 = vsyncadd [#allocation4], 4294967264 }
 0x9f2   :  { %5020 = vsyncpa [#allocation3], 1 }
 0x9f3   :  { %5021 = vsyncpa [#allocation4], 1 }

</bundles_post_ra>
